<compile_context>
chip_gen: v6e
topology: v6e:2x2x1
jax: 0.10.0
libtpu: 0.0.40
codegen_flags: <defaults>
</compile_context>

<pallas_src>
import functools

import jax
import jax.numpy as jnp
from jax.experimental import pallas as pl
from jax.experimental.pallas import tpu as pltpu

_LANES = 128
_SUBLANES = 8
_VMEM_BUDGET = 20 * 1024 * 1024   # conservative tile budget: fits v5e/v6e/v7x
_VMEM_LIMIT = 32 * 1024 * 1024    # scoped-VMEM limit passed to Mosaic


def _round_up(n, m):
    return ((n + m - 1) // m) * m


def _hi_encoder_kernel(x_ref, w_ref, b_ref, eps_ref, out_ref, *, z_dim):
    """One batch tile.

    x_ref   : (TB, x_dim)   input dtype (cast to W's dtype in-kernel if needed)
    w_ref   : (x_dim, WC)   fused [Wm | Wv | 0], WC = round_up(2*z_dim, 128)
    b_ref   : (1, WC)       f32 fused [bm | bv | 0]
    eps_ref : (TB, z_dim)   f32 standard-normal noise
    out_ref : (TB, OW)      OW = round_up(3*z_dim, 128), packed [mean|log_var|z|0]
    """
    zd = z_dim
    x = x_ref[...]
    if x.dtype != w_ref.dtype:
        x = x.astype(w_ref.dtype)          # in-kernel operand cast (no wrapper round-trip)

    # Single fused matmul on the MXU with f32 accumulation.
    h = jnp.dot(x, w_ref[...], preferred_element_type=jnp.float32) + b_ref[...]

    mean = h[:, :zd]
    log_var = jnp.clip(h[:, zd:2 * zd], -15.0, 15.0)
    # Reparameterization: z = mean + eps * exp(0.5 * log_var)   (VPU/EUP, f32)
    z = mean + eps_ref[...] * jnp.exp(0.5 * log_var)

    # Pack [mean | log_var | z] (+ zero pad) into one lane-dense slab and store
    # it with a single unmasked, 128-lane-aligned store.
    pieces = [mean, log_var, z]
    pad_w = out_ref.shape[-1] - 3 * zd
    if pad_w:
        pieces.append(jnp.zeros((mean.shape[0], pad_w), jnp.float32))
    out_ref[...] = jnp.concatenate(pieces, axis=-1).astype(out_ref.dtype)


def fuse_hi_encoder_params(wm, bm, wv, bv, *, compute_dtype=jnp.float32):
    """Build the fused/padded weight & bias ONCE (hoisted out of the forward).

    wm, wv: (x_dim, z_dim)  -- transposed PyTorch Linear weights
    bm, bv: (1, z_dim) or (z_dim,)
    Returns W (x_dim, round_up(2*z_dim,128)) in compute_dtype and b (1, same) f32.
    """
    x_dim, z_dim = wm.shape
    wcols = _round_up(2 * z_dim, _LANES)
    w = jnp.zeros((x_dim, wcols), compute_dtype)
    w = w.at[:, :z_dim].set(wm.astype(compute_dtype))
    w = w.at[:, z_dim:2 * z_dim].set(wv.astype(compute_dtype))
    b = jnp.zeros((1, wcols), jnp.float32)
    b = b.at[:, :z_dim].set(jnp.reshape(bm, (1, z_dim)).astype(jnp.float32))
    b = b.at[:, z_dim:2 * z_dim].set(jnp.reshape(bv, (1, z_dim)).astype(jnp.float32))
    return w, b


@functools.partial(jax.jit, static_argnames=("z_dim", "out_dtype", "block_b"))
def hi_encoder_forward(x, w_fused, b_fused, eps, *, z_dim,
                       out_dtype=jnp.float32, block_b=1024):
    """HIEncoder forward.

    x       : (B, x_dim)          f32 (or bf16 if stored that way upstream)
    w_fused : (x_dim, WC)         from fuse_hi_encoder_params (f32 or bf16)
    b_fused : (1, WC)             f32
    eps     : (B, z_dim)          f32 standard-normal noise (torch.randn_like equivalent)
    """
    B, x_dim = x.shape
    zd = z_dim
    wcols = w_fused.shape[1]
    assert wcols == _round_up(2 * zd, _LANES), "w_fused width mismatch"
    out_width = _round_up(3 * zd, _LANES)

    xb = x.dtype.itemsize
    wb = w_fused.dtype.itemsize
    eb = eps.dtype.itemsize
    ob = jnp.dtype(out_dtype).itemsize

    # ---- batch tiling --------------------------------------------------------
    tb = _round_up(min(block_b, _round_up(B, _SUBLANES)), _SUBLANES)
    if B >= 2 * _SUBLANES:
        # Guarantee >=2 grid steps so the "parallel" batch axis can be sharded
        # across both v7x TensorCores (harmless on v5e/v6e).
        tb = min(tb, _round_up((B + 1) // 2, _SUBLANES))

    def footprint(t):
        # BlockSpec double-buffers the pipelined operands; W/bias stay resident.
        per_step = t * x_dim * xb + t * zd * eb + t * out_width * ob
        resident = x_dim * wcols * wb + wcols * 4
        return 2 * per_step + resident

    while tb > _SUBLANES and footprint(tb) > _VMEM_BUDGET:
        tb = _round_up(tb // 2, _SUBLANES)

    b_pad = _round_up(B, tb)
    if b_pad != B:                       # pad rows only when strictly required
        x = jnp.pad(x, ((0, b_pad - B), (0, 0)))
        eps = jnp.pad(eps, ((0, b_pad - B), (0, 0)))

    grid = (b_pad // tb,)

    cost = pl.CostEstimate(
        flops=2 * b_pad * x_dim * wcols,
        transcendentals=b_pad * zd,
        bytes_accessed=(b_pad * x_dim * xb + x_dim * wcols * wb + wcols * 4
                        + b_pad * zd * eb + b_pad * out_width * ob),
    )

    out = pl.pallas_call(
        functools.partial(_hi_encoder_kernel, z_dim=zd),
        out_shape=jax.ShapeDtypeStruct((b_pad, out_width), out_dtype),
        grid=grid,
        in_specs=[
            pl.BlockSpec((tb, x_dim), lambda i: (i, 0)),      # x tile, pipelined
            pl.BlockSpec((x_dim, wcols), lambda i: (0, 0)),   # fused W, VMEM-resident
            pl.BlockSpec((1, wcols), lambda i: (0, 0)),       # fused bias, resident
            pl.BlockSpec((tb, zd), lambda i: (i, 0)),         # compact eps tile
        ],
        out_specs=pl.BlockSpec((tb, out_width), lambda i: (i, 0)),
        compiler_params=pltpu.CompilerParams(
            dimension_semantics=("parallel",),
            vmem_limit_bytes=_VMEM_LIMIT,
        ),
        cost_estimate=cost,
    )(x, w_fused, b_fused, eps)

    # Slice the real latent columns / batch rows back out of the packed slab.
    mean = out[:B, :zd]
    log_var = out[:B, zd:2 * zd]
    z = out[:B, 2 * zd:3 * zd]

    samples = {"s": [], "z": z}
    q_params = {"z": [mean, log_var]}
    return samples, q_params


def init_params(key, x_dim, z_dim):
    """Matches HIEncoder.__init__: weights ~ N(0, 0.005); biases keep the
    nn.Linear default U(-1/sqrt(x_dim), 1/sqrt(x_dim)). Weights are stored as
    (x_dim, z_dim) == W^T of the PyTorch (z_dim, x_dim) weight."""
    k1, k2, k3, k4 = jax.random.split(key, 4)
    bound = 1.0 / jnp.sqrt(jnp.float32(x_dim))
    wm = 0.005 * jax.random.normal(k1, (x_dim, z_dim), dtype=jnp.float32)
    wv = 0.005 * jax.random.normal(k2, (x_dim, z_dim), dtype=jnp.float32)
    bm = jax.random.uniform(k3, (1, z_dim), minval=-bound, maxval=bound, dtype=jnp.float32)
    bv = jax.random.uniform(k4, (1, z_dim), minval=-bound, maxval=bound, dtype=jnp.float32)
    return wm, bm, wv, bv


if __name__ == "__main__":
    # Small shapes consistent with the module: X is (batch, x_dim); h_dim is
    # unused by the module (it has no hidden layer).
    B, x_dim, h_dim, z_dim = 8, 32, 16, 8

    key = jax.random.PRNGKey(0)
    k_x, k_p, k_eps, k_x2, k_eps2 = jax.random.split(key, 5)

    x = jax.random.normal(k_x, (B, x_dim), dtype=jnp.float32)
    wm, bm, wv, bv = init_params(k_p, x_dim, z_dim)
    eps = jax.random.normal(k_eps, (B, z_dim), dtype=jnp.float32)

    def reference(x_, eps_):
        m = x_ @ wm + bm
        lv = jnp.clip(x_ @ wv + bv, -15.0, 15.0)
        return m, lv, m + eps_ * jnp.exp(0.5 * lv)

    mean_ref, lv_ref, z_ref = reference(x, eps)

    # Fused/padded params built ONCE (hoisted out of the per-call forward).
    w_f32, b_f32 = fuse_hi_encoder_params(wm, bm, wv, bv, compute_dtype=jnp.float32)

    # --- 1) f32 path: exact check ---------------------------------------------
    samples, q_params = hi_encoder_forward(x, w_f32, b_f32, eps, z_dim=z_dim)
    z = jax.block_until_ready(samples["z"])
    mean, log_var = q_params["z"]
    jax.block_until_ready(mean)
    jax.block_until_ready(log_var)
    assert mean.shape == (B, z_dim) and log_var.shape == (B, z_dim) and z.shape == (B, z_dim)
    assert jnp.allclose(mean, mean_ref, atol=1e-5), "mean mismatch (f32)"
    assert jnp.allclose(log_var, lv_ref, atol=1e-5), "log_var mismatch (f32)"
    assert jnp.allclose(z, z_ref, atol=1e-5), "z mismatch (f32)"

    # --- 2) non-divisible batch / multi-step parallel grid ---------------------
    B2 = 37
    x2 = jax.random.normal(k_x2, (B2, x_dim), dtype=jnp.float32)
    eps2 = jax.random.normal(k_eps2, (B2, z_dim), dtype=jnp.float32)
    m2_ref, lv2_ref, z2_ref = reference(x2, eps2)
    s2, q2 = hi_encoder_forward(x2, w_f32, b_f32, eps2, z_dim=z_dim, block_b=16)
    z2 = jax.block_until_ready(s2["z"])
    m2, lv2 = q2["z"]
    assert z2.shape == (B2, z_dim)
    assert jnp.allclose(m2, m2_ref, atol=1e-5), "mean mismatch (padded batch)"
    assert jnp.allclose(lv2, lv2_ref, atol=1e-5), "log_var mismatch (padded batch)"
    assert jnp.allclose(z2, z2_ref, atol=1e-5), "z mismatch (padded batch)"

    # --- 3) bf16 matmul operands + bf16 output (halves HBM traffic) ------------
    w_bf16, b_bf16 = fuse_hi_encoder_params(wm, bm, wv, bv, compute_dtype=jnp.bfloat16)
    s3, q3 = hi_encoder_forward(x, w_bf16, b_bf16, eps, z_dim=z_dim,
                                out_dtype=jnp.bfloat16)
    z3 = jax.block_until_ready(s3["z"]).astype(jnp.float32)
    m3 = q3["z"][0].astype(jnp.float32)
    lv3 = q3["z"][1].astype(jnp.float32)
    assert jnp.allclose(m3, mean_ref, atol=5e-2), "mean mismatch (bf16)"
    assert jnp.allclose(lv3, lv_ref, atol=5e-2), "log_var mismatch (bf16)"
    assert jnp.allclose(z3, z_ref, atol=5e-2), "z mismatch (bf16)"

    print("KERNEL_OK")
</pallas_src>

<mosaic_0001>
module attributes {stable_mosaic.version = 11 : i64} {
  func.func @_hi_encoder_kernel(%arg0: i32, %arg1: memref<8x32xf32, #tpu.memory_space<vmem>>, %arg2: memref<32x128xf32, #tpu.memory_space<vmem>>, %arg3: memref<1x128xf32, #tpu.memory_space<vmem>>, %arg4: memref<8x8xf32, #tpu.memory_space<vmem>>, %arg5: memref<8x128xf32, #tpu.memory_space<vmem>>) attributes {dimension_semantics = [#tpu.dimension_semantics<parallel>], iteration_bounds = array<i64: 1>, scalar_prefetch = 0 : i64, scratch_operands = 0 : i64, tpu.core_type = #tpu.core_type<tc>, window_params = [{transform_indices = @transform_0, window_bounds = array<i64: 8, 32>}, {pipeline_mode = #tpu.pipeline_mode<synchronous>, transform_indices = @transform_1, window_bounds = array<i64: 32, 128>}, {pipeline_mode = #tpu.pipeline_mode<synchronous>, transform_indices = @transform_2, window_bounds = array<i64: 1, 128>}, {transform_indices = @transform_3, window_bounds = array<i64: 8, 8>}, {transform_indices = @transform_4, window_bounds = array<i64: 8, 128>}]} {
    %c0 = arith.constant 0 : index
    %c0_0 = arith.constant 0 : index
    %0 = vector.load %arg1[%c0, %c0_0] : memref<8x32xf32, #tpu.memory_space<vmem>>, vector<8x32xf32>
    %c0_1 = arith.constant 0 : index
    %c0_2 = arith.constant 0 : index
    %1 = vector.load %arg2[%c0_1, %c0_2] : memref<32x128xf32, #tpu.memory_space<vmem>>, vector<32x128xf32>
    %cst = arith.constant dense<0.000000e+00> : vector<8x128xf32>
    %2 = tpu.matmul %0, %1, %cst {dimension_numbers = #tpu.dot_dimension_numbers<[1], [0], [0], [1], [0, 0, 1, 1], [], []>} : vector<8x32xf32>, vector<32x128xf32>, vector<8x128xf32> -> vector<8x128xf32>
    %c0_3 = arith.constant 0 : index
    %c0_4 = arith.constant 0 : index
    %3 = vector.load %arg3[%c0_3, %c0_4] : memref<1x128xf32, #tpu.memory_space<vmem>>, vector<1x128xf32>
    %4 = vector.broadcast %3 : vector<1x128xf32> to vector<8x128xf32>
    %5 = arith.addf %2, %4 : vector<8x128xf32>
    %6 = vector.extract_strided_slice %5 {offsets = [0, 0], sizes = [8, 8], strides = [1, 1]} : vector<8x128xf32> to vector<8x8xf32>
    %7 = vector.extract_strided_slice %5 {offsets = [0, 8], sizes = [8, 8], strides = [1, 1]} : vector<8x128xf32> to vector<8x8xf32>
    %cst_5 = arith.constant -1.500000e+01 : f32
    %cst_6 = arith.constant 1.500000e+01 : f32
    %8 = vector.broadcast %cst_5 : f32 to vector<8x8xf32>
    %9 = arith.maximumf %8, %7 : vector<8x8xf32>
    %10 = vector.broadcast %cst_6 : f32 to vector<8x8xf32>
    %11 = arith.minimumf %10, %9 : vector<8x8xf32>
    %c0_7 = arith.constant 0 : index
    %c0_8 = arith.constant 0 : index
    %12 = vector.load %arg4[%c0_7, %c0_8] : memref<8x8xf32, #tpu.memory_space<vmem>>, vector<8x8xf32>
    %cst_9 = arith.constant 5.000000e-01 : f32
    %13 = vector.broadcast %cst_9 : f32 to vector<8x8xf32>
    %14 = arith.mulf %13, %11 : vector<8x8xf32>
    %15 = math.exp %14 : vector<8x8xf32>
    %16 = arith.mulf %12, %15 : vector<8x8xf32>
    %17 = arith.addf %6, %16 : vector<8x8xf32>
    %cst_10 = arith.constant 0.000000e+00 : f32
    %18 = vector.broadcast %cst_10 : f32 to vector<8x104xf32>
    %19 = tpu.concatenate %6, %11, %17, %18 in 1 : vector<8x8xf32>, vector<8x8xf32>, vector<8x8xf32>, vector<8x104xf32> -> vector<8x128xf32>
    %c0_11 = arith.constant 0 : index
    %c0_12 = arith.constant 0 : index
    %20 = vector.load %arg5[%c0_11, %c0_12] : memref<8x128xf32, #tpu.memory_space<vmem>>, vector<8x128xf32>
    tpu.vector_store %arg5[%c0_11, %c0_12], %19 {strides = array<i32>} : memref<8x128xf32, #tpu.memory_space<vmem>>, vector<8x128xf32>,
    return
  }
  func.func @transform_0(%arg0: i32) -> (i32, i32) {
    %c0_i32 = arith.constant 0 : i32
    %c0_i32_0 = arith.constant 0 : i32
    return %arg0, %c0_i32 : i32, i32
  }
  func.func @transform_1(%arg0: i32) -> (i32, i32) {
    %c0_i32 = arith.constant 0 : i32
    %c0_i32_0 = arith.constant 0 : i32
    %c0_i32_1 = arith.constant 0 : i32
    return %c0_i32, %c0_i32_0 : i32, i32
  }
  func.func @transform_2(%arg0: i32) -> (i32, i32) {
    %c0_i32 = arith.constant 0 : i32
    %c0_i32_0 = arith.constant 0 : i32
    %c0_i32_1 = arith.constant 0 : i32
    return %c0_i32, %c0_i32_0 : i32, i32
  }
  func.func @transform_3(%arg0: i32) -> (i32, i32) {
    %c0_i32 = arith.constant 0 : i32
    %c0_i32_0 = arith.constant 0 : i32
    return %arg0, %c0_i32 : i32, i32
  }
  func.func @transform_4(%arg0: i32) -> (i32, i32) {
    %c0_i32 = arith.constant 0 : i32
    %c0_i32_0 = arith.constant 0 : i32
    return %arg0, %c0_i32 : i32, i32
  }
}

</mosaic_0001>

<bundles_post_ra>
// kernel: hi_encoder_forward.1
= control target key start
LH: loop header
LB: loop body
LE: loop exit
PB: predicated region body
PF: predicated region fallthrough
CT: control target
= control target key end

     0   :  { %9 = vsyncpa [#allocation3], 0  ;;  %s312_s0 = inlined_call_operand.hbm [shape: f32[8,32], index: 0, kind: input, shape index: {}]   ;;  %s313_s1 = inlined_call_operand.hbm [shape: f32[32,128], index: 1, kind: input, shape index: {}]   ;;  %s314_s2 = inlined_call_operand.vmem [shape: f32[1,128], index: 2, kind: input, shape index: {}]   ;;  %s315_s3 = inlined_call_operand.hbm [shape: f32[8,8], index: 3, kind: input, shape index: {}]   ;;  %s316_s4 = inlined_call_operand.vmem [shape: f32[8,128], index: 4, kind: output, shape index: {}]  }
   0x1   :  { %10 = vsyncpa [#allocation5], 0  ;;  %s263_s15 = smov [#allocation4]  }
   0x2   :  { %s26_s16 = sshll.u32 %s263_s15, 4  ;;  %s27_s16 = int_to_ptr.vmem [resolvable:$true] %s26_s16 }
   0x3   :  { %s207_s17 = scalar_lea.vmem %s27_s16, 512  ;;  %p212_p1 = scmp.lt.s32.totalorder %s27_s16, %s27_s16 }
   0x4   :  { %p208_p0 = scmp.ne.s32.totalorder %s27_s16, %s207_s17  ;;  %p213_p2 = scmp.lt.s32.totalorder %s207_s17, %s207_s17 }
   0x6   :  { %p214_p3 = por %p213_p2, %p212_p1 }
   0x8   :  { %p215_p4 = pnand %p214_p3, %p208_p0 }
   0xa   :  { %218 = shalt.err (!%p215_p4)
}
   0xb   :  { %s264_s18 = smov 128   ;;  %s265_s19 = smov 8  }
   0xc   :  { %32 = dma.hbm_to_vmem [thread:$0]  %s313_s1, 512, %s27_s16, [#allocation5], %s264_s18, %s264_s18, %s265_s19  }
   0xd   :  { %s266_s22 = smov [#allocation2]   ;;  %s267_s24 = smov [#allocation6]  }
   0xe   :  { %s17_s23 = sshll.u32 %s266_s22, 4  ;;  %s41_s25 = sshll.u32 %s267_s24, 4  ;;  %s18_s23 = int_to_ptr.vmem [resolvable:$true] %s17_s23  ;;  %s42_s25 = int_to_ptr.vmem [resolvable:$true] %s41_s25 }
   0xf   :  { %s227_s26 = scalar_lea.vmem %s18_s23, 128  ;;  %p232_p6 = scmp.lt.s32.totalorder %s18_s23, %s18_s23 }
  0x10   :  { %p228_p5 = scmp.ne.s32.totalorder %s18_s23, %s227_s26  ;;  %p233_p7 = scmp.lt.s32.totalorder %s227_s26, %s227_s26 }
  0x12   :  { %p234_p8 = por %p233_p7, %p232_p6 }
  0x14   :  { %p235_p9 = pnand %p234_p8, %p228_p5 }
  0x16   :  { %238 = shalt.err (!%p235_p9)
}
  0x17   :  { %20 = dma.hbm_to_vmem [thread:$0]  %s312_s0, 128, %s18_s23, [#allocation3]  }
  0x18   :  { %s247_s29 = scalar_lea.vmem %s42_s25, 128  ;;  %p252_p11 = scmp.lt.s32.totalorder %s42_s25, %s42_s25 }
  0x19   :  { %p248_p10 = scmp.ne.s32.totalorder %s42_s25, %s247_s29  ;;  %p253_p12 = scmp.lt.s32.totalorder %s247_s29, %s247_s29 }
  0x1b   :  { %p254_p13 = por %p253_p12, %p252_p11 }
  0x1d   :  { %p255_p0 = pnand %p254_p13, %p248_p10 }
  0x1f   :  { %258 = shalt.err (!%p255_p0)
}
  0x20   :  { %44 = dma.hbm_to_vmem [thread:$0]  %s315_s3, 128, %s42_s25, [#allocation5]  }
  0x21   :  { %259 = dma.done.wait [#allocation3], 128  }
  0x22   :  { %260 = vsyncadd [#allocation3], 4294967168 }
  0x23   :  { %261 = dma.done.wait [#allocation5], 640  }
  0x24   :  { %262 = vsyncadd [#allocation5], 4294966656  ;;  %v268_v0 = vmov 0.0   ;;  %vm269_vm0 = vmmov 0   ;;  %v58_v1 = vld [vmem:[#allocation4 + $0x18] sm:$0xff]  ;;  %v57_v2 = vld [vmem:[#allocation4 + $0x10] sm:$0xff] }
  0x25   :  { %177 = vmatprep.subr.mxu0 %v268_v0  ;;  %185 = vmatprep.mubr.msk.f32.mxu0 %vm269_vm0, %v268_v0  ;;  %v56_v3 = vld [vmem:[#allocation4 + $0x8] sm:$0xff]  ;;  %v55_v4 = vld [vmem:[#allocation4] sm:$0xff]  ;;  %v54_v5 = vld [vmem:[#allocation2] sm:$0xff]  ;;  %vm66_vm1 = vcmask 261120   ;;  %s270_s5 = smov 120   ;;  %s271_s6 = smov 16  }
  0x26   :  { %178 = vmatpush3.msra.mxu0 %v58_v1  ;;  %v169_v6 = vld [vmem:[%s314_s2] ss:$0 sm:$0xff]  ;;  %v142_v14 = vld [vmem:[#allocation6] sm:$0xff]  ;;  %vm156_vm2 = vcmask 64512   ;;  %vm158_vm3 = vcmask 130048   ;;  %vm160_vm4 = vcmask 195584  }
  0x27   :  { %179 = vmatprep.subr.mxu0 %v268_v0 }
  0x28   :  { %180 = vmatpush3.msra.mxu0 %v57_v2 }
  0x29   :  { %181 = vmatprep.subr.mxu0 %v268_v0 }
  0x2a   :  { %182 = vmatpush3.msra.mxu0 %v56_v3 }
  0x2b   :  { %183 = vmatprep.subr.mxu0 %v268_v0 }
  0x2c   :  { %184 = vmatpush3.msra.mxu0 %v55_v4 }
  0x2d   :  { %186 = vmatmul.mubr.msk.f32.vlgmr.msra.gmra.mxu0 %vm66_vm1, %v54_v5 }
  0xed   :  { %v136_v7 = vpop.f32.mrf.mxu0 }
  0xee   :  { %v137_v8 = vadd.f32 %v169_v6, %v136_v7 }
  0xef   :  { %v187_v9 = vpop.f32.mrf.mxu0 }
  0xf0   :  { %v171_v10 = vclamps-f32 %v137_v8, 15.0 }
  0xf2   :  { %v143_v11 = vmul.f32 0.5, %v171_v10  ;;  %v157_v18 = vsel %vm156_vm2, %v137_v8, %v171_v10 }
  0xf4   :  { %v144_v12 = vmul.f32 1.442695, %v143_v11 }
  0xf6   :  { %197 = vpow2.f32 %v144_v12 }
 0x103   :  { %v198_v13 = vpop.eup %197 }
 0x104   :  { %147 = vrot.lane.b32.xlu0 %v198_v13, %s270_s5 }
 0x176   :  { %v148_v15 = vpop.permute.xlu0 %147 }
 0x177   :  { %v150_v16 = vmul.f32 %v148_v15, %v142_v14 }
 0x179   :  { %v151_v17 = vadd.f32 %v150_v16, %v137_v8 }
 0x17b   :  { %153 = vrot.lane.b32.xlu0 %v151_v17, %s271_s6 }
 0x1ed   :  { %v154_v19 = vpop.permute.xlu0 %153 }
 0x1ee   :  { %v159_v20 = vsel %vm158_vm3, %v157_v18, %v154_v19 }
 0x1ef   :  { %v161_v21 = vsel %vm160_vm4, %v159_v20, 0.0 }
 0x1f0   :  { %162 = vst [vmem:[%s316_s4] sm:$0xff] %v161_v21 }
 0x1f1   :  { %167 = vsyncpa [#allocation3], 1 }
 0x1f2   :  { %168 = vsyncpa [#allocation5], 1 }

</bundles_post_ra>
